<compile_context>
chip_gen: v5e
topology: v5e:2x2
jax: 0.10.0
libtpu: 0.0.40
codegen_flags: <defaults>
</compile_context>

<pallas_src>
import jax
import jax.numpy as jnp
import numpy as np
from jax.experimental import pallas as pl
from jax.experimental.pallas import tpu as pltpu


def _round_up(x, m):
    return ((x + m - 1) // m) * m


def make_multionet_kernel(n_branch, n_trunk, p_common):
    """Kernel body with a static (unrolled) number of linear layers per net."""

    def mlp(x_ref, w_ref, b_ref, n_layers):
        # bf16 inputs -> MXU matmul with f32 accumulate -> f32 bias/ReLU.
        a = x_ref[...].astype(jnp.bfloat16)
        out = None
        for i in range(n_layers):
            out = jnp.dot(a, w_ref[i],
                          preferred_element_type=jnp.float32) + b_ref[i]
            if i < n_layers - 1:
                a = jnp.maximum(out, 0.0).astype(jnp.bfloat16)
        return out                                        # (TB, P) f32

    def kernel(bw_ref, bb_ref, tw_ref, tb_ref, smap_ref, xb_ref, xt_ref, out_ref):
        # Branch MLP: valid outputs live in lanes [0, outputs), zeros beyond.
        h = mlp(xb_ref, bw_ref, bb_ref, n_branch)          # (TB, P_b)
        # Trunk MLP with the chunk-broadcast folded into its last layer:
        # g[:, j] = trunk_out[:, j % split] for j < outputs, zeros beyond.
        g = mlp(xt_ref, tw_ref, tb_ref, n_trunk)           # (TB, P_t)

        # Fused split / multiply / reduce:
        #   out[:, i] = sum_{j // split == i} h[:, j] * g[:, j]
        # Lane-aligned static slices to the common branch-layout width, then
        # a single f32 MXU matmul against the constant segment-sum matrix.
        prod = h[:, :p_common] * g[:, :p_common]           # (TB, P_c)
        out_ref[...] = jnp.dot(prod, smap_ref[...],
                               preferred_element_type=jnp.float32)

    return kernel


def _pack_net(params, pad_dim):
    """Pack a list of (W [in,out], b [out]) into zero-padded square slabs."""
    n = len(params)
    w_slab = np.zeros((n, pad_dim, pad_dim), np.float32)
    b_slab = np.zeros((n, 1, pad_dim), np.float32)
    for i, (w, b) in enumerate(params):
        w = np.asarray(w, np.float32)
        b = np.asarray(b, np.float32).reshape(-1)
        fi, fo = w.shape
        w_slab[i, :fi, :fo] = w
        b_slab[i, 0, :fo] = b
    return jnp.asarray(w_slab, jnp.bfloat16), jnp.asarray(b_slab, jnp.float32)


def multionet_forward(branch_input, trunk_input, branch_params, trunk_params,
                      N, outputs, *, block_batch=256):
    """branch_params / trunk_params: lists of (W [in,out], b [out]) arrays."""
    assert outputs % N == 0, "MultiONetB forward requires outputs divisible by N"
    split = outputs // N

    B = branch_input.shape[0]
    in_b = branch_input.shape[1]
    in_t = trunk_input.shape[1]
    nb = len(branch_params)
    nt = len(trunk_params)

    # --- Fold the N-way broadcast of the trunk output into its last layer. ---
    # W'[:, j] = W[:, j % split], b'[j] = b[j % split] for j < outputs.
    wl = np.asarray(trunk_params[-1][0], np.float32)       # (hidden_t, split)
    bl = np.asarray(trunk_params[-1][1], np.float32).reshape(-1)
    cols = np.arange(outputs) % split
    trunk_params_folded = list(trunk_params[:-1]) + [(wl[:, cols], bl[cols])]

    # Padded feature widths (multiples of 128 -> lane-dense, MXU-aligned).
    b_dims = [in_b] + [w.shape[1] for w, _ in branch_params]
    t_dims = [in_t] + [np.asarray(w).shape[1] for w, _ in trunk_params_folded]
    P_b = _round_up(max(b_dims), 128)
    P_t = _round_up(max(t_dims), 128)
    P_c = _round_up(outputs, 128)        # common branch-layout width (<= P_b, P_t)
    P_o = _round_up(N, 128)              # lane-dense output width

    # Batch tile: multiple of 8, up to block_batch (fills the MXU M dimension).
    TB = min(block_batch, _round_up(B, 8))
    Bp = _round_up(B, TB)
    num_tiles = Bp // TB

    # --- Pack parameters into resident slabs (few DMAs, no fragmentation). ---
    wb, bb = _pack_net(branch_params, P_b)
    wt, bt = _pack_net(trunk_params_folded, P_t)

    # Constant 0/1 segment-sum matrix: out[:, j // split] += prod[:, j].
    smap = np.zeros((P_c, P_o), np.float32)
    for j in range(outputs):
        smap[j, j // split] = 1.0
    smap = jnp.asarray(smap)

    # --- Zero-pad the batched inputs to bf16 (Bp, P) slabs (half the DMA). ---
    xb = jnp.zeros((Bp, P_b), jnp.bfloat16).at[:B, :in_b].set(
        branch_input.astype(jnp.bfloat16))
    xt = jnp.zeros((Bp, P_t), jnp.bfloat16).at[:B, :in_t].set(
        trunk_input.astype(jnp.bfloat16))

    # --- VMEM budget: resident params + double-buffered tiles + activations. ---
    param_bytes = (wb.size * 2 + bb.size * 4 + wt.size * 2 + bt.size * 4 +
                   smap.size * 4)
    tile_bytes = TB * (P_b + P_t) * 2 + TB * P_o * 4
    act_bytes = 8 * TB * max(P_b, P_t) * 4
    vmem_limit = int(param_bytes + 2 * tile_bytes + act_bytes + (8 << 20))
    vmem_limit = max(16 << 20, min(vmem_limit, 48 << 20))  # stay under v7x 64 MiB

    resident = lambda shape: pl.BlockSpec(shape, lambda i: (0,) * len(shape))

    kernel = make_multionet_kernel(nb, nt, P_c)

    out_padded = pl.pallas_call(
        kernel,
        out_shape=jax.ShapeDtypeStruct((Bp, P_o), jnp.float32),
        grid=(num_tiles,),
        in_specs=[
            resident(wb.shape),            # branch weights  (nb, P_b, P_b) bf16
            resident(bb.shape),            # branch biases   (nb, 1, P_b)   f32
            resident(wt.shape),            # trunk weights   (nt, P_t, P_t) bf16
            resident(bt.shape),            # trunk biases    (nt, 1, P_t)   f32
            resident(smap.shape),          # segment-sum map (P_c, P_o)     f32
            pl.BlockSpec((TB, P_b), lambda i: (i, 0)),   # branch input tile bf16
            pl.BlockSpec((TB, P_t), lambda i: (i, 0)),   # trunk input tile  bf16
        ],
        out_specs=pl.BlockSpec((TB, P_o), lambda i: (i, 0)),
        compiler_params=pltpu.CompilerParams(
            dimension_semantics=("parallel",),
            vmem_limit_bytes=vmem_limit),
    )(wb, bb, wt, bt, smap, xb, xt)

    return out_padded[:B, :N]


def init_mlp_params(key, sizes):
    """PyTorch-Linear-style uniform(+-1/sqrt(fan_in)) init; weights as [in, out]."""
    params = []
    for fan_in, fan_out in zip(sizes[:-1], sizes[1:]):
        key, kw, kb = jax.random.split(key, 3)
        bound = 1.0 / np.sqrt(fan_in)
        w = jax.random.uniform(kw, (fan_in, fan_out), jnp.float32, -bound, bound)
        b = jax.random.uniform(kb, (fan_out,), jnp.float32, -bound, bound)
        params.append((w, b))
    return params, key


def reference_forward(branch_input, trunk_input, branch_params, trunk_params, N, outputs):
    """Pure-JAX f32 reference of MultiONetB.forward for correctness checking."""
    h = branch_input
    for i, (w, b) in enumerate(branch_params):
        h = h @ w + b
        if i < len(branch_params) - 1:
            h = jnp.maximum(h, 0.0)
    g = trunk_input
    for i, (w, b) in enumerate(trunk_params):
        g = g @ w + b
        if i < len(trunk_params) - 1:
            g = jnp.maximum(g, 0.0)
    p = outputs // N
    cols = [jnp.sum(h[:, i * p:(i + 1) * p] * g, axis=1, keepdims=True)
            for i in range(N)]
    return jnp.concatenate(cols, axis=1)


if __name__ == "__main__":
    # Small configuration consistent with MultiONetB.__init__:
    #   inputs_b=16, hidden_b=32, layers_b=2, inputs_t=8, hidden_t=32, layers_t=2,
    #   outputs=40, N=5  ->  trunk_outputs = 40 // 5 = 8
    B = 8
    inputs_b, hidden_b, layers_b = 16, 32, 2
    inputs_t, hidden_t, layers_t = 8, 32, 2
    outputs, N = 40, 5
    trunk_outputs = outputs // N

    key = jax.random.PRNGKey(0)

    # BranchNet: layers_b + 1 linears: inputs_b -> hidden_b -> ... -> outputs
    branch_sizes = [inputs_b] + [hidden_b] * layers_b + [outputs]
    branch_params, key = init_mlp_params(key, branch_sizes)

    # TrunkNet: layers_t + 1 linears: inputs_t -> hidden_t -> ... -> outputs // N
    trunk_sizes = [inputs_t] + [hidden_t] * layers_t + [trunk_outputs]
    trunk_params, key = init_mlp_params(key, trunk_sizes)

    key, kb, kt = jax.random.split(key, 3)
    branch_input = jax.random.normal(kb, (B, inputs_b), jnp.float32)
    trunk_input = jax.random.normal(kt, (B, inputs_t), jnp.float32)

    out = multionet_forward(branch_input, trunk_input, branch_params, trunk_params,
                            N, outputs)
    out = jax.block_until_ready(out)

    ref = reference_forward(branch_input, trunk_input, branch_params, trunk_params,
                            N, outputs)
    # bf16 weights / activations inside the kernel vs pure-f32 reference.
    np.testing.assert_allclose(np.asarray(out), np.asarray(ref), rtol=2e-2, atol=2e-2)

    assert out.shape == (B, N)
    print("KERNEL_OK")
</pallas_src>

<mosaic_0001>
module attributes {stable_mosaic.version = 11 : i64} {
  func.func @kernel(%arg0: i32, %arg1: memref<3x128x128xbf16, #tpu.memory_space<vmem>>, %arg2: memref<3x1x128xf32, #tpu.memory_space<vmem>>, %arg3: memref<3x128x128xbf16, #tpu.memory_space<vmem>>, %arg4: memref<3x1x128xf32, #tpu.memory_space<vmem>>, %arg5: memref<128x128xf32, #tpu.memory_space<vmem>>, %arg6: memref<8x128xbf16, #tpu.memory_space<vmem>>, %arg7: memref<8x128xbf16, #tpu.memory_space<vmem>>, %arg8: memref<8x128xf32, #tpu.memory_space<vmem>>) attributes {dimension_semantics = [#tpu.dimension_semantics<parallel>], iteration_bounds = array<i64: 1>, scalar_prefetch = 0 : i64, scratch_operands = 0 : i64, tpu.core_type = #tpu.core_type<tc>, window_params = [{pipeline_mode = #tpu.pipeline_mode<synchronous>, transform_indices = @transform_0, window_bounds = array<i64: 3, 128, 128>}, {pipeline_mode = #tpu.pipeline_mode<synchronous>, transform_indices = @transform_1, window_bounds = array<i64: 3, 1, 128>}, {pipeline_mode = #tpu.pipeline_mode<synchronous>, transform_indices = @transform_2, window_bounds = array<i64: 3, 128, 128>}, {pipeline_mode = #tpu.pipeline_mode<synchronous>, transform_indices = @transform_3, window_bounds = array<i64: 3, 1, 128>}, {pipeline_mode = #tpu.pipeline_mode<synchronous>, transform_indices = @transform_4, window_bounds = array<i64: 128, 128>}, {transform_indices = @transform_5, window_bounds = array<i64: 8, 128>}, {transform_indices = @transform_6, window_bounds = array<i64: 8, 128>}, {transform_indices = @transform_7, window_bounds = array<i64: 8, 128>}]} {
    %c0 = arith.constant 0 : index
    %c0_0 = arith.constant 0 : index
    %0 = vector.load %arg6[%c0, %c0_0] : memref<8x128xbf16, #tpu.memory_space<vmem>>, vector<8x128xbf16>
    %c0_1 = arith.constant 0 : index
    %c0_2 = arith.constant 0 : index
    %c0_3 = arith.constant 0 : index
    %1 = vector.load %arg1[%c0_1, %c0_2, %c0_3] : memref<3x128x128xbf16, #tpu.memory_space<vmem>>, vector<1x128x128xbf16>
    %2 = vector.shape_cast %1 : vector<1x128x128xbf16> to vector<128x128xbf16>
    %cst = arith.constant dense<0.000000e+00> : vector<8x128xf32>
    %3 = tpu.matmul %0, %2, %cst {dimension_numbers = #tpu.dot_dimension_numbers<[1], [0], [0], [1], [0, 0, 1, 1], [], []>} : vector<8x128xbf16>, vector<128x128xbf16>, vector<8x128xf32> -> vector<8x128xf32>
    %c0_4 = arith.constant 0 : index
    %c0_5 = arith.constant 0 : index
    %c0_6 = arith.constant 0 : index
    %4 = vector.load %arg2[%c0_4, %c0_5, %c0_6] : memref<3x1x128xf32, #tpu.memory_space<vmem>>, vector<1x1x128xf32>
    %5 = vector.shape_cast %4 : vector<1x1x128xf32> to vector<1x128xf32>
    %6 = vector.broadcast %5 : vector<1x128xf32> to vector<8x128xf32>
    %7 = arith.addf %3, %6 : vector<8x128xf32>
    %cst_7 = arith.constant 0.000000e+00 : f32
    %8 = vector.broadcast %cst_7 : f32 to vector<8x128xf32>
    %9 = arith.maximumf %7, %8 : vector<8x128xf32>
    %10 = arith.truncf %9 : vector<8x128xf32> to vector<8x128xbf16>
    %c1 = arith.constant 1 : index
    %c0_8 = arith.constant 0 : index
    %c0_9 = arith.constant 0 : index
    %11 = vector.load %arg1[%c1, %c0_8, %c0_9] : memref<3x128x128xbf16, #tpu.memory_space<vmem>>, vector<1x128x128xbf16>
    %12 = vector.shape_cast %11 : vector<1x128x128xbf16> to vector<128x128xbf16>
    %cst_10 = arith.constant dense<0.000000e+00> : vector<8x128xf32>
    %13 = tpu.matmul %10, %12, %cst_10 {dimension_numbers = #tpu.dot_dimension_numbers<[1], [0], [0], [1], [0, 0, 1, 1], [], []>} : vector<8x128xbf16>, vector<128x128xbf16>, vector<8x128xf32> -> vector<8x128xf32>
    %c1_11 = arith.constant 1 : index
    %c0_12 = arith.constant 0 : index
    %c0_13 = arith.constant 0 : index
    %14 = vector.load %arg2[%c1_11, %c0_12, %c0_13] : memref<3x1x128xf32, #tpu.memory_space<vmem>>, vector<1x1x128xf32>
    %15 = vector.shape_cast %14 : vector<1x1x128xf32> to vector<1x128xf32>
    %16 = vector.broadcast %15 : vector<1x128xf32> to vector<8x128xf32>
    %17 = arith.addf %13, %16 : vector<8x128xf32>
    %cst_14 = arith.constant 0.000000e+00 : f32
    %18 = vector.broadcast %cst_14 : f32 to vector<8x128xf32>
    %19 = arith.maximumf %17, %18 : vector<8x128xf32>
    %20 = arith.truncf %19 : vector<8x128xf32> to vector<8x128xbf16>
    %c2 = arith.constant 2 : index
    %c0_15 = arith.constant 0 : index
    %c0_16 = arith.constant 0 : index
    %21 = vector.load %arg1[%c2, %c0_15, %c0_16] : memref<3x128x128xbf16, #tpu.memory_space<vmem>>, vector<1x128x128xbf16>
    %22 = vector.shape_cast %21 : vector<1x128x128xbf16> to vector<128x128xbf16>
    %cst_17 = arith.constant dense<0.000000e+00> : vector<8x128xf32>
    %23 = tpu.matmul %20, %22, %cst_17 {dimension_numbers = #tpu.dot_dimension_numbers<[1], [0], [0], [1], [0, 0, 1, 1], [], []>} : vector<8x128xbf16>, vector<128x128xbf16>, vector<8x128xf32> -> vector<8x128xf32>
    %c2_18 = arith.constant 2 : index
    %c0_19 = arith.constant 0 : index
    %c0_20 = arith.constant 0 : index
    %24 = vector.load %arg2[%c2_18, %c0_19, %c0_20] : memref<3x1x128xf32, #tpu.memory_space<vmem>>, vector<1x1x128xf32>
    %25 = vector.shape_cast %24 : vector<1x1x128xf32> to vector<1x128xf32>
    %26 = vector.broadcast %25 : vector<1x128xf32> to vector<8x128xf32>
    %27 = arith.addf %23, %26 : vector<8x128xf32>
    %c0_21 = arith.constant 0 : index
    %c0_22 = arith.constant 0 : index
    %28 = vector.load %arg7[%c0_21, %c0_22] : memref<8x128xbf16, #tpu.memory_space<vmem>>, vector<8x128xbf16>
    %c0_23 = arith.constant 0 : index
    %c0_24 = arith.constant 0 : index
    %c0_25 = arith.constant 0 : index
    %29 = vector.load %arg3[%c0_23, %c0_24, %c0_25] : memref<3x128x128xbf16, #tpu.memory_space<vmem>>, vector<1x128x128xbf16>
    %30 = vector.shape_cast %29 : vector<1x128x128xbf16> to vector<128x128xbf16>
    %cst_26 = arith.constant dense<0.000000e+00> : vector<8x128xf32>
    %31 = tpu.matmul %28, %30, %cst_26 {dimension_numbers = #tpu.dot_dimension_numbers<[1], [0], [0], [1], [0, 0, 1, 1], [], []>} : vector<8x128xbf16>, vector<128x128xbf16>, vector<8x128xf32> -> vector<8x128xf32>
    %c0_27 = arith.constant 0 : index
    %c0_28 = arith.constant 0 : index
    %c0_29 = arith.constant 0 : index
    %32 = vector.load %arg4[%c0_27, %c0_28, %c0_29] : memref<3x1x128xf32, #tpu.memory_space<vmem>>, vector<1x1x128xf32>
    %33 = vector.shape_cast %32 : vector<1x1x128xf32> to vector<1x128xf32>
    %34 = vector.broadcast %33 : vector<1x128xf32> to vector<8x128xf32>
    %35 = arith.addf %31, %34 : vector<8x128xf32>
    %cst_30 = arith.constant 0.000000e+00 : f32
    %36 = vector.broadcast %cst_30 : f32 to vector<8x128xf32>
    %37 = arith.maximumf %35, %36 : vector<8x128xf32>
    %38 = arith.truncf %37 : vector<8x128xf32> to vector<8x128xbf16>
    %c1_31 = arith.constant 1 : index
    %c0_32 = arith.constant 0 : index
    %c0_33 = arith.constant 0 : index
    %39 = vector.load %arg3[%c1_31, %c0_32, %c0_33] : memref<3x128x128xbf16, #tpu.memory_space<vmem>>, vector<1x128x128xbf16>
    %40 = vector.shape_cast %39 : vector<1x128x128xbf16> to vector<128x128xbf16>
    %cst_34 = arith.constant dense<0.000000e+00> : vector<8x128xf32>
    %41 = tpu.matmul %38, %40, %cst_34 {dimension_numbers = #tpu.dot_dimension_numbers<[1], [0], [0], [1], [0, 0, 1, 1], [], []>} : vector<8x128xbf16>, vector<128x128xbf16>, vector<8x128xf32> -> vector<8x128xf32>
    %c1_35 = arith.constant 1 : index
    %c0_36 = arith.constant 0 : index
    %c0_37 = arith.constant 0 : index
    %42 = vector.load %arg4[%c1_35, %c0_36, %c0_37] : memref<3x1x128xf32, #tpu.memory_space<vmem>>, vector<1x1x128xf32>
    %43 = vector.shape_cast %42 : vector<1x1x128xf32> to vector<1x128xf32>
    %44 = vector.broadcast %43 : vector<1x128xf32> to vector<8x128xf32>
    %45 = arith.addf %41, %44 : vector<8x128xf32>
    %cst_38 = arith.constant 0.000000e+00 : f32
    %46 = vector.broadcast %cst_38 : f32 to vector<8x128xf32>
    %47 = arith.maximumf %45, %46 : vector<8x128xf32>
    %48 = arith.truncf %47 : vector<8x128xf32> to vector<8x128xbf16>
    %c2_39 = arith.constant 2 : index
    %c0_40 = arith.constant 0 : index
    %c0_41 = arith.constant 0 : index
    %49 = vector.load %arg3[%c2_39, %c0_40, %c0_41] : memref<3x128x128xbf16, #tpu.memory_space<vmem>>, vector<1x128x128xbf16>
    %50 = vector.shape_cast %49 : vector<1x128x128xbf16> to vector<128x128xbf16>
    %cst_42 = arith.constant dense<0.000000e+00> : vector<8x128xf32>
    %51 = tpu.matmul %48, %50, %cst_42 {dimension_numbers = #tpu.dot_dimension_numbers<[1], [0], [0], [1], [0, 0, 1, 1], [], []>} : vector<8x128xbf16>, vector<128x128xbf16>, vector<8x128xf32> -> vector<8x128xf32>
    %c2_43 = arith.constant 2 : index
    %c0_44 = arith.constant 0 : index
    %c0_45 = arith.constant 0 : index
    %52 = vector.load %arg4[%c2_43, %c0_44, %c0_45] : memref<3x1x128xf32, #tpu.memory_space<vmem>>, vector<1x1x128xf32>
    %53 = vector.shape_cast %52 : vector<1x1x128xf32> to vector<1x128xf32>
    %54 = vector.broadcast %53 : vector<1x128xf32> to vector<8x128xf32>
    %55 = arith.addf %51, %54 : vector<8x128xf32>
    %56 = arith.mulf %27, %55 : vector<8x128xf32>
    %c0_46 = arith.constant 0 : index
    %c0_47 = arith.constant 0 : index
    %57 = vector.load %arg5[%c0_46, %c0_47] : memref<128x128xf32, #tpu.memory_space<vmem>>, vector<128x128xf32>
    %cst_48 = arith.constant dense<0.000000e+00> : vector<8x128xf32>
    %58 = tpu.matmul %56, %57, %cst_48 {dimension_numbers = #tpu.dot_dimension_numbers<[1], [0], [0], [1], [0, 0, 1, 1], [], []>} : vector<8x128xf32>, vector<128x128xf32>, vector<8x128xf32> -> vector<8x128xf32>
    %c0_49 = arith.constant 0 : index
    %c0_50 = arith.constant 0 : index
    %59 = vector.load %arg8[%c0_49, %c0_50] : memref<8x128xf32, #tpu.memory_space<vmem>>, vector<8x128xf32>
    tpu.vector_store %arg8[%c0_49, %c0_50], %58 {strides = array<i32>} : memref<8x128xf32, #tpu.memory_space<vmem>>, vector<8x128xf32>,
    return
  }
  func.func @transform_0(%arg0: i32) -> (i32, i32, i32) {
    %c0_i32 = arith.constant 0 : i32
    %c0_i32_0 = arith.constant 0 : i32
    %c0_i32_1 = arith.constant 0 : i32
    %c0_i32_2 = arith.constant 0 : i32
    return %c0_i32, %c0_i32_0, %c0_i32_1 : i32, i32, i32
  }
  func.func @transform_1(%arg0: i32) -> (i32, i32, i32) {
    %c0_i32 = arith.constant 0 : i32
    %c0_i32_0 = arith.constant 0 : i32
    %c0_i32_1 = arith.constant 0 : i32
    %c0_i32_2 = arith.constant 0 : i32
    return %c0_i32, %c0_i32_0, %c0_i32_1 : i32, i32, i32
  }
  func.func @transform_2(%arg0: i32) -> (i32, i32, i32) {
    %c0_i32 = arith.constant 0 : i32
    %c0_i32_0 = arith.constant 0 : i32
    %c0_i32_1 = arith.constant 0 : i32
    %c0_i32_2 = arith.constant 0 : i32
    return %c0_i32, %c0_i32_0, %c0_i32_1 : i32, i32, i32
  }
  func.func @transform_3(%arg0: i32) -> (i32, i32, i32) {
    %c0_i32 = arith.constant 0 : i32
    %c0_i32_0 = arith.constant 0 : i32
    %c0_i32_1 = arith.constant 0 : i32
    %c0_i32_2 = arith.constant 0 : i32
    return %c0_i32, %c0_i32_0, %c0_i32_1 : i32, i32, i32
  }
  func.func @transform_4(%arg0: i32) -> (i32, i32) {
    %c0_i32 = arith.constant 0 : i32
    %c0_i32_0 = arith.constant 0 : i32
    %c0_i32_1 = arith.constant 0 : i32
    return %c0_i32, %c0_i32_0 : i32, i32
  }
  func.func @transform_5(%arg0: i32) -> (i32, i32) {
    %c0_i32 = arith.constant 0 : i32
    %c0_i32_0 = arith.constant 0 : i32
    return %arg0, %c0_i32 : i32, i32
  }
  func.func @transform_6(%arg0: i32) -> (i32, i32) {
    %c0_i32 = arith.constant 0 : i32
    %c0_i32_0 = arith.constant 0 : i32
    return %arg0, %c0_i32 : i32, i32
  }
  func.func @transform_7(%arg0: i32) -> (i32, i32) {
    %c0_i32 = arith.constant 0 : i32
    %c0_i32_0 = arith.constant 0 : i32
    return %arg0, %c0_i32 : i32, i32
  }
}

</mosaic_0001>

<bundles_post_ra>
// kernel: tpu_custom_call.1
= control target key start
LH: loop header
LB: loop body
LE: loop exit
PB: predicated region body
PF: predicated region fallthrough
CT: control target
= control target key end

     0   :  { %12 = vsyncpa [#allocation3], 0  ;;  %s1195_s0 = inlined_call_operand.hbm [shape: bf16[3,128,128], index: 0, kind: input, shape index: {}]   ;;  %s1196_s1 = inlined_call_operand.hbm [shape: f32[3,1,128], index: 1, kind: input, shape index: {}]   ;;  %s1197_s2 = inlined_call_operand.hbm [shape: bf16[3,128,128], index: 2, kind: input, shape index: {}]   ;;  %s1198_s3 = inlined_call_operand.hbm [shape: f32[3,1,128], index: 3, kind: input, shape index: {}]   ;;  %s1199_s4 = inlined_call_operand.hbm [shape: f32[128,128], index: 4, kind: input, shape index: {}]   ;;  %s1200_s5 = inlined_call_operand.vmem [shape: bf16[8,128], index: 5, kind: input, shape index: {}]   ;;  %s1201_s6 = inlined_call_operand.hbm [shape: bf16[8,128], index: 6, kind: input, shape index: {}]   ;;  %s1202_s7 = inlined_call_operand.hbm [shape: f32[8,128], index: 7, kind: output, shape index: {}]  }
   0x1   :  { %13 = vsyncpa [#allocation6], 0 }
   0x2   :  { %14 = vsyncpa [#allocation9], 0 }
   0x3   :  { %15 = vsyncpa [#allocation12], 0  ;;  %s34_s26 = sshll.u32 %s1196_s1, 4  ;;  %s35_s26 = int_to_ptr.hbm [resolvable:$true] %s34_s26 }
   0x4   :  { %16 = vsyncpa [#allocation4], 0  ;;  %s1118_s27 = smov [#allocation5]   ;;  %s60_s8 = sshll.u32 %s1198_s3, 4  ;;  %s61_s8 = int_to_ptr.hbm [resolvable:$true] %s60_s8 }
   0x5   :  { %s36_s28 = sshll.u32 %s1118_s27, 4  ;;  %s1119_s9 = smov 16   ;;  %s37_s28 = int_to_ptr.vmem [resolvable:$true] %s36_s28 }
   0x6   :  { %s1120_s10 = smov 1   ;;  %s1121_s11 = smov [#allocation8]  }
   0x7   :  { %42 = dma.hbm_to_vmem [thread:$0]  %s35_s26, 48, %s37_s28, [#allocation6], %s1119_s9, %s1119_s9, %s1120_s10  }
   0x8   :  { %s62_s12 = sshll.u32 %s1121_s11, 4  ;;  %s21_s15 = sshll.u32 %s1195_s0, 4  ;;  %s63_s12 = int_to_ptr.vmem [resolvable:$true] %s62_s12  ;;  %s22_s15 = int_to_ptr.hbm [resolvable:$true] %s21_s15 }
   0x9   :  { %68 = dma.hbm_to_vmem [thread:$0]  %s61_s8, 48, %s63_s12, [#allocation9], %s1119_s9, %s1119_s9, %s1120_s10  }
   0xa   :  { %s1122_s1 = smov [#allocation2]   ;;  %s47_s3 = sshll.u32 %s1197_s2, 4  ;;  %s48_s3 = int_to_ptr.hbm [resolvable:$true] %s47_s3 }
   0xb   :  { %s23_s16 = sshll.u32 %s1122_s1, 4  ;;  %s1123_s19 = smov 64   ;;  %s24_s16 = int_to_ptr.vmem [resolvable:$true] %s23_s16 }
   0xc   :  { %s1124_s20 = smov 4   ;;  %s1125_s21 = smov [#allocation7]  }
   0xd   :  { %29 = dma.hbm_to_vmem [thread:$0]  %s22_s15, 3072, %s24_s16, [#allocation3], %s1123_s19, %s1123_s19, %s1124_s20  }
   0xe   :  { %s49_s22 = sshll.u32 %s1125_s21, 4  ;;  %s73_s0 = sshll.u32 %s1199_s4, 4  ;;  %s50_s22 = int_to_ptr.vmem [resolvable:$true] %s49_s22  ;;  %s74_s0 = int_to_ptr.hbm [resolvable:$true] %s73_s0 }
   0xf   :  { %55 = dma.hbm_to_vmem [thread:$0]  %s48_s3, 3072, %s50_s22, [#allocation6], %s1123_s19, %s1123_s19, %s1124_s20  }
  0x10   :  { %s1126_s25 = smov [#allocation10]   ;;  %s89_s2 = sshll.u32 %s1201_s6, 4  ;;  %s90_s2 = int_to_ptr.hbm [resolvable:$true] %s89_s2 }
  0x11   :  { %s75_s26 = sshll.u32 %s1126_s25, 4  ;;  %s1127_s29 = smov 128   ;;  %s76_s26 = int_to_ptr.vmem [resolvable:$true] %s75_s26 }
  0x12   :  { %s1128_s30 = smov 8   ;;  %s1129_s8 = smov [#allocation11]  }
  0x13   :  { %81 = dma.hbm_to_vmem [thread:$0]  %s74_s0, 2048, %s76_s26, [#allocation9], %s1127_s29, %s1127_s29, %s1128_s30  }
  0x14   :  { %s91_s9 = sshll.u32 %s1129_s8, 4  ;;  %s92_s9 = int_to_ptr.vmem [resolvable:$true] %s91_s9 }
  0x15   :  { %94 = dma.hbm_to_vmem [thread:$0]  %s90_s2, 64, %s92_s9, [#allocation12]  }
  0x16   :  { %1108 = dma.done.wait [#allocation3], 3072  }
  0x17   :  { %1109 = vsyncadd [#allocation3], 4294964224 }
  0x18   :  { %1110 = dma.done.wait [#allocation6], 3120  }
  0x19   :  { %1111 = vsyncadd [#allocation6], 4294964176 }
  0x1a   :  { %1112 = dma.done.wait [#allocation9], 2096  }
  0x1b   :  { %1113 = vsyncadd [#allocation9], 4294965200 }
  0x1c   :  { %1114 = dma.done.wait [#allocation12], 64  }
  0x1d   :  { %1115 = vsyncadd [#allocation12], 4294967232  ;;  %v880_v0 = vld [vmem:[#allocation2 + $0x38] sm:$0xff]  ;;  %v879_v2 = vld [vmem:[#allocation2 + $0x30] sm:$0xff]  ;;  %s668_s13 = sshll.u32 %s1202_s7, 4  ;;  %s669_s13 = int_to_ptr.hbm [resolvable:$true] %s668_s13 }
  0x1e   :  { %v904_v1 = vld [vmem:[#allocation7 + $0x38] sm:$0xff]  ;;  %188 = vmatpush.bf16.msra.mxu0 %v880_v0  ;;  %v903_v3 = vld [vmem:[#allocation7 + $0x30] sm:$0xff]  ;;  %v878_v4 = vld [vmem:[#allocation2 + $0x28] sm:$0xff] }
  0x1f   :  { %440 = vmatpush.bf16.msra.mxu3 %v904_v1  ;;  %v902_v5 = vld [vmem:[#allocation7 + $0x28] sm:$0xff]  ;;  %v888_v6 = vld [vmem:[#allocation2 + $0x78] sm:$0xff]  ;;  %v877_v7 = vld [vmem:[#allocation2 + $0x20] sm:$0xff] }
  0x20   :  { %v901_v8 = vld [vmem:[#allocation7 + $0x20] sm:$0xff]  ;;  %273 = vmatpush.bf16.msra.mxu1 %v888_v6  ;;  %v887_v9 = vld [vmem:[#allocation2 + $0x70] sm:$0xff]  ;;  %v876_v11 = vld [vmem:[#allocation2 + $0x18] sm:$0xff] }
  0x21   :  { %v886_v10 = vld [vmem:[#allocation2 + $0x68] sm:$0xff]  ;;  %v900_v12 = vld [vmem:[#allocation7 + $0x18] sm:$0xff]  ;;  %v875_v14 = vld [vmem:[#allocation2 + $0x10] sm:$0xff] }
  0x22   :  { %189 = vmatpush.bf16.msra.mxu0 %v879_v2  ;;  %v885_v13 = vld [vmem:[#allocation2 + $0x60] sm:$0xff]  ;;  %v899_v15 = vld [vmem:[#allocation7 + $0x10] sm:$0xff]  ;;  %v874_v17 = vld [vmem:[#allocation2 + $0x8] sm:$0xff] }
  0x23   :  { %441 = vmatpush.bf16.msra.mxu3 %v903_v3  ;;  %v884_v16 = vld [vmem:[#allocation2 + $0x58] sm:$0xff]  ;;  %v898_v18 = vld [vmem:[#allocation7 + $0x8] sm:$0xff]  ;;  %v873_v20 = vld [vmem:[#allocation2] sm:$0xff] }
  0x24   :  { %274 = vmatpush.bf16.msra.mxu1 %v887_v9  ;;  %v883_v19 = vld [vmem:[#allocation2 + $0x50] sm:$0xff]  ;;  %v897_v21 = vld [vmem:[#allocation7] sm:$0xff]  ;;  %v912_v22 = vld [vmem:[#allocation7 + $0x78] sm:$0xff] }
  0x25   :  { %v119_v23 = vld [vmem:[%s1200_s5] sm:$0xf]  ;;  %v371_v24 = vld [vmem:[#allocation11] sm:$0xf]  ;;  %v911_v25 = vld [vmem:[#allocation7 + $0x70] sm:$0xff]  ;;  %s1130_s5 = smov [#allocation13]  }
  0x26   :  { %190 = vmatpush.bf16.msra.mxu0 %v878_v4  ;;  %v910_v26 = vld [vmem:[#allocation7 + $0x68] sm:$0xff]  ;;  %v909_v27 = vld [vmem:[#allocation7 + $0x60] sm:$0xff]  ;;  %v908_v28 = vld [vmem:[#allocation7 + $0x58] sm:$0xff]  ;;  %s666_s10 = sshll.u32 %s1130_s5, 4  ;;  %s667_s10 = int_to_ptr.vmem [resolvable:$true] %s666_s10 }
  0x27   :  { %442 = vmatpush.bf16.msra.mxu3 %v902_v5  ;;  %v882_v29 = vld [vmem:[#allocation2 + $0x48] sm:$0xff]  ;;  %v907_v30 = vld [vmem:[#allocation7 + $0x50] sm:$0xff]  ;;  %v881_v31 = vld [vmem:[#allocation2 + $0x40] sm:$0xff] }
  0x28   :  { %275 = vmatpush.bf16.msra.mxu1 %v886_v10  ;;  %v906_v32 = vld [vmem:[#allocation7 + $0x48] sm:$0xff]  ;;  %v905_v33 = vld [vmem:[#allocation7 + $0x40] sm:$0xff]  ;;  %v896_v34 = vld [vmem:[#allocation2 + $0xb8] sm:$0xff] }
  0x29   :  { %v920_v35 = vld [vmem:[#allocation7 + $0xb8] sm:$0xff]  ;;  %358 = vmatpush.bf16.msra.mxu2 %v896_v34  ;;  %v895_v36 = vld [vmem:[#allocation2 + $0xb0] sm:$0xff]  ;;  %v894_v38 = vld [vmem:[#allocation2 + $0xa8] sm:$0xff] }
  0x2a   :  { %191 = vmatpush.bf16.msra.mxu0 %v877_v7  ;;  %v919_v37 = vld [vmem:[#allocation7 + $0xb0] sm:$0xff]  ;;  %v918_v39 = vld [vmem:[#allocation7 + $0xa8] sm:$0xff]  ;;  %v893_v40 = vld [vmem:[#allocation2 + $0xa0] sm:$0xff] }
  0x2b   :  { %443 = vmatpush.bf16.msra.mxu3 %v901_v8  ;;  %v917_v41 = vld [vmem:[#allocation7 + $0xa0] sm:$0xff]  ;;  %v892_v42 = vld [vmem:[#allocation2 + $0x98] sm:$0xff]  ;;  %v934_v44 = vld [vmem:[#allocation5] ss:$0 sm:$0xff] }
  0x2c   :  { %276 = vmatpush.bf16.msra.mxu1 %v885_v13  ;;  %v916_v43 = vld [vmem:[#allocation7 + $0x98] sm:$0xff]  ;;  %v891_v46 = vld [vmem:[#allocation2 + $0x90] sm:$0xff]  ;;  %v935_v49 = vld [vmem:[#allocation8] ss:$0 sm:$0xff] }
  0x2d   :  { %359 = vmatpush.bf16.msra.mxu2 %v895_v36  ;;  %v890_v57 = vld [vmem:[#allocation2 + $0x88] sm:$0xff]  ;;  %v915_v58 = vld [vmem:[#allocation7 + $0x90] sm:$0xff]  ;;  %v889_v59 = vld [vmem:[#allocation2 + $0x80] sm:$0xff] }
  0x2e   :  { %192 = vmatpush.bf16.msra.mxu0 %v876_v11  ;;  %v914_v60 = vld [vmem:[#allocation7 + $0x88] sm:$0xff]  ;;  %v913_v61 = vld [vmem:[#allocation7 + $0x80] sm:$0xff]  ;;  %v638_v63 = vld [vmem:[#allocation10 + $0x70] sm:$0xff] }
  0x2f   :  { %444 = vmatpush.bf16.msra.mxu3 %v900_v12  ;;  %v639_v62 = vld [vmem:[#allocation10 + $0x78] sm:$0xff]  ;;  %v637_v0 = vld [vmem:[#allocation10 + $0x68] sm:$0xff]  ;;  %v636_v1 = vld [vmem:[#allocation10 + $0x60] sm:$0xff] }
  0x30   :  { %277 = vmatpush.bf16.msra.mxu1 %v884_v16  ;;  %v635_v2 = vld [vmem:[#allocation10 + $0x58] sm:$0xff]  ;;  %v634_v3 = vld [vmem:[#allocation10 + $0x50] sm:$0xff]  ;;  %v633_v4 = vld [vmem:[#allocation10 + $0x48] sm:$0xff] }
  0x31   :  { %360 = vmatpush.bf16.msra.mxu2 %v894_v38  ;;  %v632_v5 = vld [vmem:[#allocation10 + $0x40] sm:$0xff]  ;;  %v631_v6 = vld [vmem:[#allocation10 + $0x38] sm:$0xff]  ;;  %v630_v8 = vld [vmem:[#allocation10 + $0x30] sm:$0xff] }
  0x32   :  { %193 = vmatpush.bf16.msra.mxu0 %v875_v14  ;;  %v936_v7 = vld [vmem:[#allocation5 + $0x1] ss:$0 sm:$0xff]  ;;  %v629_v10 = vld [vmem:[#allocation10 + $0x28] sm:$0xff]  ;;  %v628_v12 = vld [vmem:[#allocation10 + $0x20] sm:$0xff] }
  0x33   :  { %445 = vmatpush.bf16.msra.mxu3 %v899_v15  ;;  %v937_v14 = vld [vmem:[#allocation8 + $0x1] ss:$0 sm:$0xff] }
  0x34   :  { %278 = vmatpush.bf16.msra.mxu1 %v883_v19  ;;  %v627_v16 = vld [vmem:[#allocation10 + $0x18] sm:$0xff] }
  0x35   :  { %361 = vmatpush.bf16.msra.mxu2 %v893_v40 }
  0x36   :  { %194 = vmatpush.bf16.msra.mxu0 %v874_v17 }
  0x37   :  { %446 = vmatpush.bf16.msra.mxu3 %v898_v18 }
  0x38   :  { %279 = vmatpush.bf16.msra.mxu1 %v882_v29 }
  0x39   :  { %362 = vmatpush.bf16.msra.mxu2 %v892_v42 }
  0x3a   :  { %195 = vmatpush.bf16.msra.mxu0 %v873_v20 }
  0x3b   :  { %447 = vmatpush.bf16.msra.mxu3 %v897_v21 }
  0x3c   :  { %280 = vmatpush.bf16.msra.mxu1 %v881_v31 }
  0x3d   :  { %196 = vmatmul.bf16.vlgmr.msra.gmra.mxu0 %v119_v23  ;;  %363 = vmatpush.bf16.msra.mxu2 %v891_v46  ;;  %v626_v23 = vld [vmem:[#allocation10 + $0x10] sm:$0xff] }
  0x3e   :  { %525 = vmatpush.bf16.msrb.mxu0 %v912_v22  ;;  %448 = vmatmul.bf16.vlgmr.msra.gmra.mxu3 %v371_v24  ;;  %v625_v24 = vld [vmem:[#allocation10 + $0x8] sm:$0xff] }
  0x40   :  { %610 = vmatpush.bf16.msrb.mxu1 %v920_v35 }
  0x41   :  { %364 = vmatpush.bf16.msra.mxu2 %v890_v57 }
  0x42   :  { %526 = vmatpush.bf16.msrb.mxu0 %v911_v25  ;;  %v624_v25 = vld [vmem:[#allocation10] sm:$0xff] }
  0x44   :  { %611 = vmatpush.bf16.msrb.mxu1 %v919_v37 }
  0x45   :  { %365 = vmatpush.bf16.msra.mxu2 %v889_v59 }
  0x46   :  { %527 = vmatpush.bf16.msrb.mxu0 %v910_v26  ;;  %v938_v26 = vld [vmem:[#allocation5 + $0x2] ss:$0 sm:$0xff] }
  0x48   :  { %612 = vmatpush.bf16.msrb.mxu1 %v918_v39 }
  0x49   :  { %640 = vmatpush.msrb.mxu2 %v639_v62 }
  0x4a   :  { %528 = vmatpush.bf16.msrb.mxu0 %v909_v27  ;;  %v939_v27 = vld [vmem:[#allocation8 + $0x2] ss:$0 sm:$0xff] }
  0x4b   :  { %641 = vmatpush.msrb.mxu2 %v638_v63 }
  0x4c   :  { %613 = vmatpush.bf16.msrb.mxu1 %v917_v41 }
  0x4d   :  { %642 = vmatpush.msrb.mxu2 %v637_v0 }
  0x4e   :  { %529 = vmatpush.bf16.msrb.mxu0 %v908_v28 }
  0x4f   :  { %643 = vmatpush.msrb.mxu2 %v636_v1 }
  0x50   :  { %614 = vmatpush.bf16.msrb.mxu1 %v916_v43 }
  0x51   :  { %644 = vmatpush.msrb.mxu2 %v635_v2 }
  0x52   :  { %530 = vmatpush.bf16.msrb.mxu0 %v907_v30 }
  0x53   :  { %645 = vmatpush.msrb.mxu2 %v634_v3 }
  0x54   :  { %615 = vmatpush.bf16.msrb.mxu1 %v915_v58 }
  0x55   :  { %646 = vmatpush.msrb.mxu2 %v633_v4 }
  0x56   :  { %531 = vmatpush.bf16.msrb.mxu0 %v906_v32 }
  0x57   :  { %647 = vmatpush.msrb.mxu2 %v632_v5 }
  0x58   :  { %616 = vmatpush.bf16.msrb.mxu1 %v914_v60 }
  0x59   :  { %648 = vmatpush.msrb.mxu2 %v631_v6 }
  0x5a   :  { %532 = vmatpush.bf16.msrb.mxu0 %v905_v33 }
  0x5b   :  { %649 = vmatpush.msrb.mxu2 %v630_v8 }
  0x5c   :  { %617 = vmatpush.bf16.msrb.mxu1 %v913_v61 }
  0x5d   :  { %650 = vmatpush.msrb.mxu2 %v629_v10 }
  0x5f   :  { %651 = vmatpush.msrb.mxu2 %v628_v12 }
  0x61   :  { %652 = vmatpush.msrb.mxu2 %v627_v16 }
  0x63   :  { %653 = vmatpush.msrb.mxu2 %v626_v23 }
  0x65   :  { %654 = vmatpush.msrb.mxu2 %v625_v24 }
  0x67   :  { %655 = vmatpush.msrb.mxu2 %v624_v25 }
  0xba   :  { %v197_v45 = vpop.f32.mrf.mxu0 }
  0xbb   :  { %v198_v47 = vadd.f32 %v934_v44, %v197_v45 }
  0xbd   :  { %v201_v48 = vmax.f32 %v198_v47, 0.0 }
  0xbf   :  { %v202_v50 = vpack.c.bf16 %v201_v48, %v201_v48 }
  0xc1   :  { %v449_v51 = vpop.f32.mrf.mxu3  ;;  %281 = vmatmul.bf16.vlgmr.msra.gmra.mxu1 %v202_v50 }
  0xc2   :  { %v450_v52 = vadd.f32 %v935_v49, %v449_v51  ;;  %v199_v53 = vpop.f32.mrf.mxu0 }
  0xc4   :  { %v453_v54 = vmax.f32 %v450_v52, 0.0 }
  0xc6   :  { %v454_v55 = vpack.c.bf16 %v453_v54, %v453_v54 }
  0xc8   :  { %533 = vmatmul.bf16.vlgmr.msrb.gmra.mxu0 %v454_v55 }
  0xc9   :  { %v451_v56 = vpop.f32.mrf.mxu3 }
 0x13e   :  { %v282_v9 = vpop.f32.mrf.mxu1 }
 0x13f   :  { %v283_v11 = vadd.f32 %v936_v7, %v282_v9 }
 0x141   :  { %v286_v13 = vmax.f32 %v283_v11, 0.0 }
 0x143   :  { %v287_v15 = vpack.c.bf16 %v286_v13, %v286_v13 }
 0x145   :  { %v534_v17 = vpop.f32.mrf.mxu0  ;;  %366 = vmatmul.bf16.vlgmr.msra.gmra.mxu2 %v287_v15 }
 0x146   :  { %v535_v18 = vadd.f32 %v937_v14, %v534_v17  ;;  %v284_v19 = vpop.f32.mrf.mxu1 }
 0x148   :  { %v538_v20 = vmax.f32 %v535_v18, 0.0 }
 0x14a   :  { %v539_v21 = vpack.c.bf16 %v538_v20, %v538_v20 }
 0x14c   :  { %618 = vmatmul.bf16.vlgmr.msrb.gmra.mxu1 %v539_v21 }
 0x14d   :  { %v536_v22 = vpop.f32.mrf.mxu0 }
 0x1c8   :  { %v367_v28 = vpop.f32.mrf.mxu2 }
 0x1c9   :  { %v619_v29 = vpop.f32.mrf.mxu1  ;;  %v368_v30 = vadd.f32 %v938_v26, %v367_v28 }
 0x1ca   :  { %v620_v31 = vadd.f32 %v939_v27, %v619_v29 }
 0x1cc   :  { %v623_v32 = vmul.f32 %v620_v31, %v368_v30 }
 0x1ce   :  { %656 = vmatmul.f32.vlgmr.msrb.gmra.mxu2 %v623_v32 }
 0x1d0   :  { %v369_v33 = vpop.f32.mrf.mxu2 }
 0x1d1   :  { %v621_v34 = vpop.f32.mrf.mxu1 }
 0x251   :  { %v657_v35 = vpop.f32.mrf.mxu2 }
 0x252   :  { %660 = vst [vmem:[#allocation13] sm:$0xff] %v657_v35 }
 0x253   :  { %671 = dma.vmem_to_hbm [thread:$0]  %s667_s10, 128, %s669_s13, [#allocation4]  }
 0x254   :  { %1116 = dma.done.wait [#allocation4], 128  }
 0x255   :  { %1117 = vsyncadd [#allocation4], 4294967168 }
 0x256   :  { %676 = vsyncpa [#allocation3], 1 }
 0x257   :  { %677 = vsyncpa [#allocation6], 1 }
 0x258   :  { %678 = vsyncpa [#allocation9], 1 }
 0x259   :  { %679 = vsyncpa [#allocation12], 1 }
 0x25a   :  { %680 = vsyncpa [#allocation4], 1 }

</bundles_post_ra>
